<compile_context>
chip_gen: v6e
topology: v6e:2x2x1
jax: 0.10.0
libtpu: 0.0.40
codegen_flags: <defaults>
</compile_context>

<pallas_src>
import jax
import jax.numpy as jnp
from jax.experimental import pallas as pl
from jax.experimental.pallas import tpu as pltpu


# --------------------------------------------------------------------------- #
# Kernel
# --------------------------------------------------------------------------- #
def _tt_criterion_kernel(logits_ref, labels_ref, nll_ref, seq_ref):
    """One row-tile of the criterion.

    logits_ref : (TILE_R, V) input dtype (f32 or bf16)
    labels_ref : (TILE_R, 1) i32 target token ids
    nll_ref    : (TILE_R, 1) f32 per-token negative log-likelihood (unmasked)
    seq_ref    : (TILE_R, 1) i32 argmax over vocab (greedy "sequence")
    """
    x = logits_ref[...].astype(jnp.float32)          # single per-tile upcast
    labels = labels_ref[...]                         # (TILE_R, 1) int32
    v = x.shape[-1]

    col = jax.lax.broadcasted_iota(jnp.int32, x.shape, 1)   # (TILE_R, V)

    # Stable shift; `shifted` is the only long-lived (TILE_R, V) f32 temporary.
    row_max = jnp.max(x, axis=-1, keepdims=True)             # (TILE_R, 1)
    shifted = x - row_max                                     # (TILE_R, V)

    # Argmax (first occurrence, matches torch/jnp): shifted == 0 exactly where
    # x == row_max for finite values.  Select + min-reduce (XLU, free slot).
    idx_cand = jnp.where(shifted == 0.0, col, v)
    seq_ref[...] = jnp.min(idx_cand, axis=-1, keepdims=True).astype(jnp.int32)

    # NLL = logsumexp(shifted) - shifted[label]; exp/log run on the EUP.
    lse = jnp.log(jnp.sum(jnp.exp(shifted), axis=-1, keepdims=True))
    tgt = jnp.sum(jnp.where(col == labels, shifted, 0.0), axis=-1, keepdims=True)
    nll_ref[...] = lse - tgt


# --------------------------------------------------------------------------- #
# Tile sizing helpers
# --------------------------------------------------------------------------- #
def _round_up(x, m):
    return (x + m - 1) // m * m


def _vmem_scoped_bytes():
    """Scoped-VMEM request: half of physical VMEM, capped at 64 MiB.

    v5e/v6e (128 MiB physical) -> 64 MiB scoped; v7x (64 MiB) -> 32 MiB scoped,
    leaving headroom for the compiler's own buffering/spill space.
    """
    cap = 128 * 1024 * 1024
    try:
        info = pltpu.get_tpu_info()
        cap = int(getattr(info, "vmem_capacity_bytes", 0)) or cap
    except Exception:
        pass
    return min(cap // 2, 64 * 1024 * 1024)


def _choose_tile_r(vocab, itemsize, n_rows, budget_bytes):
    """Largest row tile whose VMEM working set fits `budget_bytes`.

    Per-row VMEM cost:
      * 2 double-buffered input tiles of the (row, V) logits (native dtype)
      * ~4 f32 (row, V) full-tile temporaries inside the kernel
      * 3 column arrays (labels in, nll/seq out), each padded to 128 lanes and
        double-buffered  -> 6 * 128 * 4 bytes per row
    Prefers a tile that divides n_rows exactly (no ragged final block) unless
    that would shrink the tile by more than 2x.
    """
    per_row = vocab * (2 * itemsize + 4 * 4) + 6 * 128 * 4
    tile = int(budget_bytes // per_row)
    tile = max(8, (tile // 8) * 8)
    tile = min(tile, 4096)                      # per-step overhead amortized well before this
    tile = min(tile, _round_up(n_rows, 8))
    t = tile
    while t >= max(tile // 2, 8):
        if n_rows % t == 0:
            return int(t)
        t -= 8
    return int(tile)


# --------------------------------------------------------------------------- #
# Wrapper (forward-pass tensor semantics of TTCriterion)
# --------------------------------------------------------------------------- #
def tt_criterion_forward(logits, label_ids, label_mask, *, tile_r=None):
    """JAX/Pallas equivalent of the tensor parts of TTCriterion.forward.

    logits     : (B, N, L, V) float32 or bfloat16
    label_ids  : (B, N, L)    integer token ids
    label_mask : (B, N, L)    {0,1} (int or float)
    """
    B, N, L, V = logits.shape
    R = B * N * L

    logits2 = logits.reshape(R, V)                         # keep native dtype
    labels2 = label_ids.reshape(R, 1).astype(jnp.int32)

    scoped_vmem = _vmem_scoped_bytes()
    itemsize = jnp.dtype(logits2.dtype).itemsize
    if tile_r is None:
        tile_r = _choose_tile_r(V, itemsize, R, scoped_vmem // 2)
    grid_r = pl.cdiv(R, tile_r)                            # ragged tail OK (row-local math)

    cost = pl.CostEstimate(
        flops=int(6 * R * V),
        transcendentals=int(R * V),
        bytes_accessed=int(R * V * itemsize + R * 16),
    )

    nll_p, seq_p = pl.pallas_call(
        _tt_criterion_kernel,
        out_shape=(
            jax.ShapeDtypeStruct((R, 1), jnp.float32),     # per-token NLL
            jax.ShapeDtypeStruct((R, 1), jnp.int32),       # argmax sequence
        ),
        grid=(grid_r,),
        in_specs=[
            pl.BlockSpec((tile_r, V), lambda i: (i, 0)),
            pl.BlockSpec((tile_r, 1), lambda i: (i, 0)),
        ],
        out_specs=(
            pl.BlockSpec((tile_r, 1), lambda i: (i, 0)),
            pl.BlockSpec((tile_r, 1), lambda i: (i, 0)),
        ),
        compiler_params=pltpu.CompilerParams(
            dimension_semantics=("parallel",),
            vmem_limit_bytes=scoped_vmem,
        ),
        cost_estimate=cost,
    )(logits2, labels2)

    nll = nll_p[:, 0].reshape(B, N, L)
    sequence = seq_p[:, 0].reshape(B, N, L)

    # Finalize in the wrapper (tiny reductions over R scalars):
    m = label_mask.astype(jnp.float32)
    loss = jnp.sum(nll * m) / jnp.maximum(jnp.sum(m), 1.0)   # masked mean CE
    ppl = jnp.exp(loss)                                       # Perplexity metric

    seq_mask = jnp.sum(label_mask, axis=-1) > 0               # (B, N)
    trans_length = jnp.sum(seq_mask.astype(jnp.int32), axis=-1)

    # TODO(synk): category/topic Accuracy metrics, tokenizer decode, and all
    # string metrics (BLEU/ROUGE/METEOR/CIDEr/SPICE/BERTScore, record_samples)
    # have no Pallas/tensor equivalent and are omitted.
    return {
        "loss": loss,
        "PPL": ppl,
        "nll": nll,
        "sequence": sequence,
        "seq_mask": seq_mask,
        "trans_length": trans_length,
    }


# --------------------------------------------------------------------------- #
# Self-test
# --------------------------------------------------------------------------- #
def _reference(logits, label_ids, label_mask):
    lp = jax.nn.log_softmax(logits.astype(jnp.float32), axis=-1)
    nll = -jnp.take_along_axis(lp, label_ids[..., None], axis=-1)[..., 0]
    m = label_mask.astype(jnp.float32)
    loss = jnp.sum(nll * m) / jnp.maximum(jnp.sum(m), 1.0)
    seq = jnp.argmax(logits.astype(jnp.float32), axis=-1).astype(jnp.int32)
    tl = jnp.sum((jnp.sum(label_mask, axis=-1) > 0).astype(jnp.int32), axis=-1)
    return nll, loss, seq, tl


if __name__ == "__main__":
    key = jax.random.PRNGKey(0)
    B, N, L, V = 2, 4, 10, 256          # small shapes; R=80

    k1, k2, k3 = jax.random.split(key, 3)
    logits = jax.random.normal(k1, (B, N, L, V), dtype=jnp.float32)
    label_ids = jax.random.randint(k2, (B, N, L), 0, V, dtype=jnp.int32)
    label_mask = (jax.random.uniform(k3, (B, N, L)) > 0.3).astype(jnp.int32)
    label_mask = label_mask.at[0, 0, :].set(0)   # a fully masked transformation

    # --- f32 path, forced small tile so the grid + ragged final block (80 % 32
    #     != 0, no wrapper-side padding) are exercised ---
    out = tt_criterion_forward(logits, label_ids, label_mask, tile_r=32)
    out = jax.block_until_ready(out)

    nll_r, loss_r, seq_r, tl_r = _reference(logits, label_ids, label_mask)
    assert jnp.allclose(out["nll"], nll_r, atol=1e-4), "nll mismatch (f32)"
    assert jnp.allclose(out["loss"], loss_r, atol=1e-4), (out["loss"], loss_r)
    assert jnp.allclose(out["PPL"], jnp.exp(loss_r), atol=1e-3), "ppl mismatch"
    assert jnp.array_equal(out["sequence"], seq_r), "argmax mismatch (f32)"
    assert jnp.array_equal(out["trans_length"], tl_r), "trans_length mismatch"

    # --- bf16 path, auto tile size (exercises the divisor-preferring tiling;
    #     no wrapper-side f32 upcast of the logits) ---
    logits_bf16 = logits.astype(jnp.bfloat16)
    out_b = tt_criterion_forward(logits_bf16, label_ids, label_mask)
    out_b = jax.block_until_ready(out_b)

    nll_rb, loss_rb, seq_rb, _ = _reference(logits_bf16, label_ids, label_mask)
    assert jnp.allclose(out_b["nll"], nll_rb, atol=1e-3), "nll mismatch (bf16)"
    assert jnp.allclose(out_b["loss"], loss_rb, atol=1e-3), "loss mismatch (bf16)"
    assert jnp.array_equal(out_b["sequence"], seq_rb), "argmax mismatch (bf16)"

    print("KERNEL_OK")
</pallas_src>

<mosaic_0001>
module attributes {stable_mosaic.version = 11 : i64} {
  func.func @_tt_criterion_kernel(%arg0: i32, %arg1: memref<32x256xf32, #tpu.memory_space<vmem>>, %arg2: memref<32x1xi32, #tpu.memory_space<vmem>>, %arg3: memref<32x1xf32, #tpu.memory_space<vmem>>, %arg4: memref<32x1xi32, #tpu.memory_space<vmem>>) attributes {dimension_semantics = [#tpu.dimension_semantics<parallel>], iteration_bounds = array<i64: 3>, scalar_prefetch = 0 : i64, scratch_operands = 0 : i64, tpu.core_type = #tpu.core_type<tc>, window_params = [{transform_indices = @transform_0, window_bounds = array<i64: 32, 256>}, {transform_indices = @transform_1, window_bounds = array<i64: 32, 1>}, {transform_indices = @transform_2, window_bounds = array<i64: 32, 1>}, {transform_indices = @transform_3, window_bounds = array<i64: 32, 1>}]} {
    %c0 = arith.constant 0 : index
    %c0_0 = arith.constant 0 : index
    %0 = vector.load %arg1[%c0, %c0_0] : memref<32x256xf32, #tpu.memory_space<vmem>>, vector<32x256xf32>
    %c0_1 = arith.constant 0 : index
    %c0_2 = arith.constant 0 : index
    %1 = vector.load %arg2[%c0_1, %c0_2] : memref<32x1xi32, #tpu.memory_space<vmem>>, vector<32x1xi32>
    %2 = tpu.iota {dimensions = array<i32: 1>} : vector<32x256xi32>
    %cst = arith.constant dense<0xFF800000> : vector<32xf32>
    %3 = vector.multi_reduction <maximumf>, %0, %cst [1] : vector<32x256xf32> to vector<32xf32>
    %4 = vector.shape_cast %3 : vector<32xf32> to vector<32x1xf32>
    %5 = vector.broadcast %4 : vector<32x1xf32> to vector<32x256xf32>
    %6 = arith.subf %0, %5 : vector<32x256xf32>
    %cst_3 = arith.constant 0.000000e+00 : f32
    %7 = vector.broadcast %cst_3 : f32 to vector<32x256xf32>
    %8 = arith.cmpf oeq, %6, %7 : vector<32x256xf32>
    %c256_i32 = arith.constant 256 : i32
    %9 = vector.broadcast %c256_i32 : i32 to vector<32x256xi32>
    %10 = arith.select %8, %2, %9 : vector<32x256xi1>, vector<32x256xi32>
    %cst_4 = arith.constant dense<2147483647> : vector<32xi32>
    %11 = vector.multi_reduction <minsi>, %10, %cst_4 [1] : vector<32x256xi32> to vector<32xi32>
    %12 = vector.shape_cast %11 : vector<32xi32> to vector<32x1xi32>
    %c0_5 = arith.constant 0 : index
    %c0_6 = arith.constant 0 : index
    %13 = vector.load %arg4[%c0_5, %c0_6] : memref<32x1xi32, #tpu.memory_space<vmem>>, vector<32x1xi32>
    tpu.vector_store %arg4[%c0_5, %c0_6], %12 {strides = array<i32>} : memref<32x1xi32, #tpu.memory_space<vmem>>, vector<32x1xi32>,
    %14 = math.exp %6 : vector<32x256xf32>
    %cst_7 = arith.constant dense<0.000000e+00> : vector<32xf32>
    %15 = vector.multi_reduction <add>, %14, %cst_7 [1] : vector<32x256xf32> to vector<32xf32>
    %16 = vector.shape_cast %15 : vector<32xf32> to vector<32x1xf32>
    %17 = math.log %16 : vector<32x1xf32>
    %18 = vector.broadcast %1 : vector<32x1xi32> to vector<32x256xi32>
    %19 = arith.cmpi eq, %2, %18 : vector<32x256xi32>
    %cst_8 = arith.constant 0.000000e+00 : f32
    %20 = vector.broadcast %cst_8 : f32 to vector<32x256xf32>
    %21 = arith.select %19, %6, %20 : vector<32x256xi1>, vector<32x256xf32>
    %cst_9 = arith.constant dense<0.000000e+00> : vector<32xf32>
    %22 = vector.multi_reduction <add>, %21, %cst_9 [1] : vector<32x256xf32> to vector<32xf32>
    %23 = vector.shape_cast %22 : vector<32xf32> to vector<32x1xf32>
    %24 = arith.subf %17, %23 : vector<32x1xf32>
    %c0_10 = arith.constant 0 : index
    %c0_11 = arith.constant 0 : index
    %25 = vector.load %arg3[%c0_10, %c0_11] : memref<32x1xf32, #tpu.memory_space<vmem>>, vector<32x1xf32>
    tpu.vector_store %arg3[%c0_10, %c0_11], %24 {strides = array<i32>} : memref<32x1xf32, #tpu.memory_space<vmem>>, vector<32x1xf32>,
    return
  }
  func.func @transform_0(%arg0: i32) -> (i32, i32) {
    %c0_i32 = arith.constant 0 : i32
    %c0_i32_0 = arith.constant 0 : i32
    return %arg0, %c0_i32 : i32, i32
  }
  func.func @transform_1(%arg0: i32) -> (i32, i32) {
    %c0_i32 = arith.constant 0 : i32
    %c0_i32_0 = arith.constant 0 : i32
    return %arg0, %c0_i32 : i32, i32
  }
  func.func @transform_2(%arg0: i32) -> (i32, i32) {
    %c0_i32 = arith.constant 0 : i32
    %c0_i32_0 = arith.constant 0 : i32
    return %arg0, %c0_i32 : i32, i32
  }
  func.func @transform_3(%arg0: i32) -> (i32, i32) {
    %c0_i32 = arith.constant 0 : i32
    %c0_i32_0 = arith.constant 0 : i32
    return %arg0, %c0_i32 : i32, i32
  }
}

</mosaic_0001>

<bundles_post_ra>
// kernel: tpu_custom_call.1
= control target key start
LH: loop header
LB: loop body
LE: loop exit
PB: predicated region body
PF: predicated region fallthrough
CT: control target
= control target key end

     0   :  { %9 = vsyncpa [#allocation3], 0  ;;  %s1725_s0 = inlined_call_operand.hbm [shape: f32[80,256], index: 0, kind: input, shape index: {}]   ;;  %s1726_s1 = inlined_call_operand.vmem [shape: s32[80,1], index: 1, kind: input, shape index: {}]   ;;  %s1727_s2 = inlined_call_operand.vmem [shape: f32[80,1], index: 2, kind: output, shape index: {0}]   ;;  %s1728_s3 = inlined_call_operand.vmem [shape: s32[80,1], index: 3, kind: output, shape index: {1}]  }
   0x1   :  { %11 = vsyncpa [#allocation3 + $0x1], 0  ;;  %s1381_s12 = smov 0   ;;  %s1383_s13 = smov 0  }
   0x2   :  { %s1385_s14 = smov 0   ;;  %s1387_s15 = smov 0  }
   0x3 LB: > { %s1400_s16 = sadd.s32 4294967295, %s1291_s15   ;;  %s1403_s17 = sadd.s32 1, %s1291_s15   ;;  %s1291_s15 = sphi %s1387_s15, %s1740_s15   ;;  %s1287_s14 = sphi %s1385_s14, %s1739_s14   ;;  %s1283_s13 = sphi %s1383_s13, %s1738_s13   ;;  %s1279_s12 = sphi %s1381_s12, %s1737_s12  }
   0x4   : > { %s21_s18 = ssub.s32 %s1291_s15, %s1403_s17  ;;  %s24_s19 = sadd.s32 1, %s1287_s14 }
   0x5   : > { %p22_p0 = scmp.eq.s32.totalorder %s21_s18, 0  ;;  %p31_p1 = scmp.ne.s32.totalorder %s1287_s14, %s1283_s13 }
   0x6   : > { %p32_p2 = scmp.eq.s32.totalorder %s1291_s15, 0  ;;  %p37_p3 = scmp.ne.s32.totalorder %s1283_s13, %s1279_s12 }
   0x7   : > { %s1413_s20 = scalar_select %p22_p0, %s1287_s14, %s24_s19  }
   0x8   : > { %p33_p4 = por %p32_p2, %p31_p1  ;;  %p38_p5 = scmp.eq.s32.totalorder %s1400_s16, 0 }
   0x9   : > { %p87_p6 = scmp.eq.s32.totalorder %s1400_s16, 2  ;;  %p920_p9 = scmp.ge.s32.totalorder %s1291_s15, 3 }
   0xa   : > { %p1417_p7 = por %p38_p5, %p37_p3 }
   0xb   : > { %p1421_p8 = por %p87_p6, %p31_p1  ;;  %135 = sbr.rel (%p920_p9) target bundleno = 48 (0x30), region = 16 }
  0x10   : > { %138 = sbr.rel (!%p33_p4) target bundleno = 48 (0x30), region = 20  ;;  %s139_s23 = sand.u32 (%p33_p4), 1, %s1287_s14  }
  0x11   : > { %s922_s24 = sshll.u32 (%p33_p4), %s1291_s15, 2  ;;  %s921_s25 = sshll.u32 (%p33_p4), %s139_s23, 6 }
  0x12   : > { %s145_s26 = ssub.s32 (%p33_p4), 10, %s922_s24  ;;  %s1431_s29 = scalar_lea.sflag (%p33_p4), [#allocation3], %s139_s23 }
  0x13   : > { %p146_p10 = scmp.lt.s32.totalorder (%p33_p4), %s145_s26, 4  ;;  %s143_s30 = scalar_lea.vmem (%p33_p4), [#allocation2], %s921_s25 }
  0x15   : > { %s1742_s26 = smov (!%p146_p10, %s145_s26), 4 }
  0x16   : > { %s1428_s27 = sshll.u32 %s1742_s26, 8 }
  0x17   : > { %s151_s28 = ssub.s32 1024, %s1428_s27 }
  0x18   : > { %152 = vsyncadd %s1431_s29, %s151_s28  ;;  %p925_p11 = scmp.ne.s32.totalorder %s1428_s27, 0  ;;  %s970_s4 = sshll.u32 %s1291_s15, 10 }
  0x19   : > { %s1439_s7 = scalar_lea.hbm %s1725_s0, %s970_s4  ;;  %s158_s8 = sshll.u32 %s143_s30, 4  ;;  %s1441_s8 = int_to_ptr.vmem [resolvable:$true] %s158_s8 }
  0x1a   : > { %s1167_s9 = scalar_lea.hbm %s1439_s7, %s1428_s27  ;;  %s1171_s12 = scalar_lea.hbm %s1725_s0, 2560 }
  0x1b   : > { %p1168_p12 = scmp.ne.s32.totalorder %s1439_s7, %s1167_s9  ;;  %p1172_p1 = scmp.lt.s32.totalorder %s1439_s7, %s1725_s0 }
  0x1c   : > { %p1173_p2 = scmp.lt.s32.totalorder %s1171_s12, %s1167_s9 }
  0x1d   : > { %p1169_p13 = pnand %p1168_p12, %p925_p11 }
  0x1e   : > { %p1174_p3 = por %p1173_p2, %p1172_p1 }
  0x1f   : > { %p1170_p0 = pneg %p1169_p13 }
  0x21   : > { %p1175_p4 = pnand %p1174_p3, %p1170_p0 }
  0x23   : > { %1178 = shalt.err (!%p1175_p4)
}
  0x24   : > { %s1179_s23 = scalar_lea.vmem %s1441_s8, %s1428_s27  ;;  %s1357_s24 = smov [#allocation2]  }
  0x25   : > { %p1180_p5 = scmp.ne.s32.totalorder %s1441_s8, %s1179_s23  ;;  %s1183_s25 = sshll.u32 %s1357_s24, 4  ;;  %s1184_s25 = int_to_ptr.vmem [resolvable:$false] %s1183_s25 }
  0x26   : > { %s1185_s26 = scalar_lea.vmem %s1184_s25, 2048  ;;  %p1186_p10 = scmp.lt.s32.totalorder %s1441_s8, %s1184_s25 }
  0x27   : > { %p1181_p6 = pnand %p1180_p5, %p925_p11  ;;  %p1187_p12 = scmp.lt.s32.totalorder %s1185_s26, %s1179_s23 }
  0x29   : > { %p1182_p9 = pneg %p1181_p6  ;;  %p1188_p13 = por %p1187_p12, %p1186_p10 }
  0x2b   : > { %p1189_p1 = pnand %p1188_p13, %p1182_p9 }
  0x2d   : > { %1192 = shalt.err (!%p1189_p1)
}
  0x2e   : > { %s1358_s28 = smov 256   ;;  %s1359_s30 = smov 16  }
  0x2f   : > { %164 = dma.hbm_to_vmem [thread:$0]  (%p925_p11), %s1439_s7, %s1428_s27, %s1441_s8, %s1431_s29, %s1358_s28, %s1358_s28, %s1359_s30  }
  0x30 PF: > { %p930_p0 = scmp.ge.s32.totalorder %s1291_s15, 1  ;;  %p183_p2 = scmp.lt.s32.totalorder %s1291_s15, 4 }
  0x32   : > { %p184_p3 = pnand %p930_p0, %p183_p2 }
  0x33   : > { %s1470_s4 = sand.u32 (!%p184_p3), 1, %s1283_s13  }
  0x34   : > { %187 = sbr.rel (%p184_p3) target bundleno = 640 (0x280), region = 28  ;;  %s931_s5 = sshll.u32 (!%p184_p3), %s1470_s4, 6 }
  0x35   : > { %s190_s6 = scalar_lea.sflag (!%p184_p3), [#allocation3], %s1470_s4  ;;  %s193_s9 = scalar_lea.vmem (!%p184_p3), [#allocation2], %s931_s5 }
  0x39   : > { %1274 = dma.done.wait (%p1417_p7), %s190_s6, 1024  }
  0x3a   : > { %1276 = vsyncadd (%p1417_p7), %s190_s6, 4294966272  ;;  %v258_v0 = vld [vmem:[%s193_s9] sm:$0xff]  ;;  %v259_v1 = vld [vmem:[%s193_s9 + $0x8] sm:$0xff]  ;;  %v1360_v12 = vmov 0   ;;  %v270_v13 = vlaneseq  ;;  %s1528_s15 = sshll.u32 %s1400_s16, 2  ;;  %s932_s10 = sshll.u32 %s1470_s4, 5 }
  0x3b   : > { %v262_v2 = vld [vmem:[%s193_s9 + $0x20] sm:$0xff]  ;;  %v273_v3 = vmax.f32 %v258_v0, %v259_v1  ;;  %v263_v4 = vld [vmem:[%s193_s9 + $0x28] sm:$0xff]  ;;  %v260_v5 = vld [vmem:[%s193_s9 + $0x10] sm:$0xff]  ;;  %1142 = vset.pattern.permute.xlu1 %v1360_v12  ;;  %1141 = vset.pattern.permute.xlu0 %v1360_v12  ;;  %p239_p7 = scmp.lt.s32.totalorder %s1528_s15, 9  ;;  %s1598_s11 = scalar_lea.vmem [#allocation4], %s932_s10  }
  0x3c   : > { %v261_v6 = vld [vmem:[%s193_s9 + $0x18] sm:$0xff]  ;;  %v279_v7 = vmax.f32 %v262_v2, %v263_v4  ;;  %v1478_v8 = vld [vmem:[%s193_s9 + $0x30] sm:$0xff]  ;;  %v1484_v14 = vand.u32 127, %v270_v13  ;;  %s1605_s12 = scalar_lea.vmem [#allocation5], %s932_s10   ;;  %s474_s18 = ssub.s32 (%p1421_p8), 10, %s1528_s15 }
  0x3d   : > { %v1480_v9 = vld [vmem:[%s193_s9 + $0x38] sm:$0xff]  ;;  %274 = vmax.xlane.f32.xlu0 %v273_v3  ;;  %v276_v10 = vmax.f32 %v260_v5, %v261_v6  ;;  %s240_s21 = scalar_select %p239_p7, %s1528_s15, 9 }
  0x3e   : > { %280 = vmax.xlane.f32.xlu1 %v279_v7  ;;  %v282_v11 = vmax.f32 %v1478_v8, %v1480_v9  ;;  %v1487_v16 = vadd.s32 128, %v1484_v14  ;;  %s971_s19 = sshll.u32 (%p1421_p8), %s1400_s16, 5  ;;  %p475_p11 = scmp.lt.s32.totalorder (%p1421_p8), %s474_s18, 4 }
  0x3f   : > { %s935_s27 = sshll.u32 %s240_s21, 3  ;;  %s1627_s25 = scalar_lea.vmem (%p1421_p8), %s1727_s2, %s971_s19  }
  0x40   : > { %s242_s8 = scalar_lea.vmem %s1726_s1, %s935_s27 }
  0x41   : > { %277 = vmax.xlane.f32.xlu0 %v276_v10  ;;  %v267_v40 = vld [vmem:[%s242_s8 + $0x8] sm:$0xff]  ;;  %v266_v41 = vld [vmem:[%s242_s8] sm:$0xff]  ;;  %v268_v42 = vld [vmem:[%s242_s8 + $0x10] sm:$0xff] }
  0x42   : > { %283 = vmax.xlane.f32.xlu1 %v282_v11  ;;  %v269_v56 = vld [vmem:[%s242_s8 + $0x18] sm:$0xff] }
  0xc6   : > { %v275_v15 = vpop.xlane.xlu0 %274 }
  0xc7   : > { %v1489_v17 = vsub.f32 %v258_v0, %v275_v15  ;;  %v1491_v18 = vsub.f32 %v259_v1, %v275_v15  ;;  %v281_v19 = vpop.xlane.xlu1 %280 }
  0xc8   : > { %v1493_v20 = vsub.f32 %v262_v2, %v281_v19  ;;  %v1495_v21 = vsub.f32 %v263_v4, %v281_v19 }
  0xc9   : > { %vm293_vm0 = vcmp.eq.f32.partialorder %v1489_v17, 0.0  ;;  %vm294_vm1 = vcmp.eq.f32.partialorder %v1491_v18, 0.0  ;;  %v378_v57 = vmul.f32 1.442695, %v1489_v17  ;;  %v380_v58 = vmul.f32 1.442695, %v1491_v18 }
  0xca   : > { %v278_v22 = vpop.xlane.xlu0 %277  ;;  %v301_v23 = vsel %vm293_vm0, %v1484_v14, 256  ;;  %v302_v24 = vsel %vm294_vm1, %v1487_v16, 256  ;;  %vm297_vm3 = vcmp.eq.f32.partialorder %v1493_v20, 0.0  ;;  %vm298_vm4 = vcmp.eq.f32.partialorder %v1495_v21, 0.0 }
  0xcb   : > { %v1501_v25 = vsub.f32 %v260_v5, %v278_v22  ;;  %v1503_v26 = vsub.f32 %v261_v6, %v278_v22  ;;  %vm309_vm2 = vcmp.lt.s32.totalorder %v301_v23, %v302_v24  ;;  %v305_v29 = vsel %vm297_vm3, %v1484_v14, 256  ;;  %v284_v45 = vpop.xlane.xlu1 %283 }
  0xcc   : > { %v1505_v27 = vsel %vm309_vm2, %v301_v23, %v302_v24  ;;  %v306_v30 = vsel %vm298_vm4, %v1487_v16, 256  ;;  %v1542_v46 = vsub.f32 %v1478_v8, %v284_v45  ;;  %v1545_v47 = vsub.f32 %v1480_v9, %v284_v45 }
  0xcd   : > { %v312_v28 = vshra.s32 %v1505_v27, 16  ;;  %vm295_vm5 = vcmp.eq.f32.partialorder %v1501_v25, 0.0  ;;  %vm341_vm6 = vcmp.lt.s32.totalorder %v305_v29, %v306_v30  ;;  %vm296_vm7 = vcmp.eq.f32.partialorder %v1503_v26, 0.0 }
  0xce   : > { %v1516_v32 = vsel %vm341_vm6, %v305_v29, %v306_v30  ;;  %v303_v33 = vsel %vm295_vm5, %v1484_v14, 256  ;;  %v304_v34 = vsel %vm296_vm7, %v1487_v16, 256  ;;  %v382_v43 = vmul.f32 1.442695, %v1501_v25 }
  0xcf   : > { %v1513_v31 = vcvt.s32.f32 %v312_v28  ;;  %v344_v35 = vshra.s32 %v1516_v32, 16  ;;  %vm325_vm8 = vcmp.lt.s32.totalorder %v303_v33, %v304_v34  ;;  %v384_v44 = vmul.f32 1.442695, %v1503_v26 }
  0xd0   : > { %v1522_v36 = vsel %vm325_vm8, %v303_v33, %v304_v34  ;;  %1143 = vpow2.f32 %v382_v43  ;;  %vm299_vm9 = vcmp.eq.f32.partialorder %v1542_v46, 0.0  ;;  %vm300_vm10 = vcmp.eq.f32.partialorder %v1545_v47, 0.0 }
  0xd1   : > { %315 = vmin.xlane.f32.xlu0 %v1513_v31  ;;  %v1524_v37 = vcvt.s32.f32 %v344_v35  ;;  %v328_v38 = vshra.s32 %v1522_v36, 16  ;;  %1145 = vpow2.f32 %v384_v44  ;;  %v307_v48 = vsel %vm299_vm9, %v1484_v14, 256 }
  0xd2   : > { %v308_v49 = vsel %vm300_vm10, %v1487_v16, 256  ;;  %1147 = vpow2.f32 %v378_v57  ;;  %v386_v62 = vmul.f32 1.442695, %v1493_v20  ;;  %v388_v63 = vmul.f32 1.442695, %v1495_v21 }
  0xd3   : > { %v1531_v39 = vcvt.s32.f32 %v328_v38  ;;  %vm357_vm11 = vcmp.lt.s32.totalorder %v307_v48, %v308_v49  ;;  %1149 = vpow2.f32 %v380_v58  ;;  %v390_v0 = vmul.f32 1.442695, %v1542_v46 }
  0xd4   : > { %v1551_v52 = vsel %vm357_vm11, %v307_v48, %v308_v49  ;;  %1151 = vpow2.f32 %v386_v62  ;;  %v392_v1 = vmul.f32 1.442695, %v1545_v47  ;;  %v343_v19 = vand.u32 65535, %v1516_v32 }
  0xd5   : > { %347 = vmin.xlane.f32.xlu0 %v1524_v37  ;;  %331 = vmin.xlane.f32.xlu1 %v1531_v39  ;;  %v360_v54 = vshra.s32 %v1551_v52, 16  ;;  %1153 = vpow2.f32 %v388_v63  ;;  %v327_v34 = vand.u32 65535, %v1522_v36  ;;  %vm373_vm8 = vcmask 7168  }
  0xd6   : > { %1155 = vpow2.f32 %v390_v0 }
  0xd7   : > { %v1554_v55 = vcvt.s32.f32 %v360_v54  ;;  %1157 = vpow2.f32 %v392_v1 }
  0xdd   : > { %v1144_v50 = vpop.eup %1143 }
  0xde   : > { %v1146_v51 = vpop.eup %1145 }
  0xdf   : > { %v397_v53 = vadd.f32 %v1146_v51, %v1144_v50  ;;  %v1148_v59 = vpop.eup %1147 }
  0xe0   : > { %v1150_v60 = vpop.eup %1149 }
  0xe1   : > { %v394_v61 = vadd.f32 %v1150_v60, %v1148_v59  ;;  %v1152_v9 = vpop.eup %1151 }
  0xe2   : > { %v1154_v11 = vpop.eup %1153 }
  0xe3   : > { %v1156_v23 = vpop.eup %1155  ;;  %v400_v24 = vadd.f32 %v1154_v11, %v1152_v9 }
  0xe6   : > { %418 = vperm.xlu1 %1142, %v267_v40  }
  0xea   : > { %421 = vperm.xlu1 %1142, %v268_v42  }
  0xeb   : > { %415 = vperm.xlu0 %1141, %v266_v41  }
 0x10a   : > { %398 = vadd.xlane.f32.xlu0 %v397_v53 }
 0x10e   : > { %363 = vmin.xlane.f32.xlu1 %v1554_v55 }
 0x11f   : > { %424 = vperm.xlu1 %1142, %v269_v56  }
 0x143   : > { %395 = vadd.xlane.f32.xlu1 %v394_v61 }
 0x15a   : > { %v1563_v2 = vpop.xlane.xlu0 %315 }
 0x15b   : > { %vm317_vm3 = vcmp.eq.f32.partialorder %v1513_v31, %v1563_v2  ;;  %v322_v56 = vcvt.f32.s32 %v1563_v2 }
 0x15d   : > { %v323_v59 = vshll.u32 %v322_v56, 16 }
 0x15e   : > { %v1565_v3 = vpop.xlane.xlu1 %331  ;;  %v1567_v4 = vpop.xlane.xlu0 %347 }
 0x15f   : > { %vm349_vm2 = vcmp.eq.f32.partialorder %v1524_v37, %v1567_v4  ;;  %vm333_vm4 = vcmp.eq.f32.partialorder %v1531_v39, %v1565_v3  ;;  %v338_v60 = vcvt.f32.s32 %v1565_v3 }
 0x161   : > { %v339_v0 = vshll.u32 %v338_v60, 16 }
 0x162   : > { %v419_v5 = vpop.permute.xlu1 %418 }
 0x163   : > { %vm428_vm12 = vcmp.eq.s32.totalorder %v1484_v14, %v419_v5  ;;  %vm429_vm13 = vcmp.eq.s32.totalorder %v1487_v16, %v419_v5 }
 0x164   : > { %v436_v7 = vsel %vm428_vm12, %v1501_v25, 0.0  ;;  %v437_v8 = vsel %vm429_vm13, %v1503_v26, 0.0  ;;  %v1158_v25 = vpop.eup %1157  ;;  %v345_v26 = vcvt.s32.f32 %v343_v19 }
 0x165   : > { %v445_v10 = vadd.f32 %v437_v8, %v436_v7  ;;  %v403_v30 = vadd.f32 %v1158_v25, %v1156_v23 }
 0x166   : > { %v416_v6 = vpop.permute.xlu0 %415  ;;  %v422_v12 = vpop.permute.xlu1 %421 }
 0x167   : > { %vm426_vm14 = vcmp.eq.s32.totalorder %v1484_v14, %v416_v6  ;;  %vm427_vm15 = vcmp.eq.s32.totalorder %v1487_v16, %v416_v6  ;;  %446 = vadd.xlane.f32.xlu1 %v445_v10  ;;  %vm430_vm0 = vcmp.eq.s32.totalorder %v1484_v14, %v422_v12  ;;  %vm431_vm1 = vcmp.eq.s32.totalorder %v1487_v16, %v422_v12 }
 0x168   : > { %v434_v13 = vsel %vm426_vm14, %v1489_v17, 0.0  ;;  %v435_v15 = vsel %vm427_vm15, %v1491_v18, 0.0  ;;  %v350_v17 = vsel %vm349_vm2, %v345_v26, inf  ;;  %v311_v18 = vand.u32 65535, %v1505_v27 }
 0x169   : > { %v442_v22 = vadd.f32 %v435_v15, %v434_v13  ;;  %v438_v28 = vsel %vm430_vm0, %v1493_v20, 0.0  ;;  %v439_v29 = vsel %vm431_vm1, %v1495_v21, 0.0  ;;  %v329_v27 = vcvt.s32.f32 %v327_v34 }
 0x16a   : > { %v448_v32 = vadd.f32 %v439_v29, %v438_v28  ;;  %v313_v33 = vcvt.s32.f32 %v311_v18  ;;  %v359_v21 = vand.u32 65535, %v1551_v52 }
 0x16b   : > { %443 = vadd.xlane.f32.xlu0 %v442_v22  ;;  %401 = vadd.xlane.f32.xlu1 %v400_v24  ;;  %v334_v20 = vsel %vm333_vm4, %v329_v27, inf }
 0x16c   : > { %v318_v35 = vsel %vm317_vm3, %v313_v33, inf  ;;  %v361_v38 = vcvt.s32.f32 %v359_v21 }
 0x16f   : > { %351 = vmin.xlane.f32.xlu0 %v350_v17  ;;  %404 = vadd.xlane.f32.xlu1 %v403_v30 }
 0x173   : > { %449 = vadd.xlane.f32.xlu0 %v448_v32  ;;  %319 = vmin.xlane.f32.xlu1 %v318_v35 }
 0x177   : > { %335 = vmin.xlane.f32.xlu1 %v334_v20 }
 0x193   : > { %v399_v42 = vpop.xlane.xlu0 %398 }
 0x194   : > { %1159 = vlog2.f32 %v399_v42 }
 0x197   : > { %v364_v37 = vpop.xlane.xlu1 %363 }
 0x198   : > { %vm365_vm5 = vcmp.eq.f32.partialorder %v1554_v55, %v364_v37  ;;  %v370_v3 = vcvt.f32.s32 %v364_v37 }
 0x199   : > { %v366_v31 = vsel %vm365_vm5, %v361_v38, inf }
 0x19a   : > { %367 = vmin.xlane.f32.xlu1 %v366_v31  ;;  %v371_v9 = vshll.u32 %v370_v3, 16 }
 0x19b   : > { %v425_v40 = vpop.permute.xlu1 %424 }
 0x19c   : > { %vm432_vm6 = vcmp.eq.s32.totalorder %v1484_v14, %v425_v40  ;;  %vm433_vm7 = vcmp.eq.s32.totalorder %v1487_v16, %v425_v40  ;;  %v354_v16 = vcvt.f32.s32 %v1567_v4 }
 0x19d   : > { %v440_v36 = vsel %vm432_vm6, %v1542_v46, 0.0  ;;  %v441_v39 = vsel %vm433_vm7, %v1545_v47, 0.0 }
 0x19e   : > { %v451_v41 = vadd.f32 %v441_v39, %v440_v36  ;;  %v355_v53 = vshll.u32 %v354_v16, 16 }
 0x1a0   : > { %452 = vadd.xlane.f32.xlu1 %v451_v41 }
 0x1a1   : > { %v1160_v44 = vpop.eup %1159 }
 0x1a2   : > { %v409_v48 = vmul.f32 0.6931472, %v1160_v44 }
 0x1cc   : > { %v396_v43 = vpop.xlane.xlu1 %395 }
 0x1cd   : > { %1161 = vlog2.f32 %v396_v43 }
 0x1da   : > { %v1162_v45 = vpop.eup %1161 }
 0x1db   : > { %v407_v14 = vmul.f32 0.6931472, %v1162_v45 }
 0x1f0   : > { %v447_v49 = vpop.xlane.xlu1 %446 }
 0x1f1   : > { %v455_v50 = vsub.f32 %v409_v48, %v447_v49 }
 0x1f3   : > { %459 = vst.msk [vmem:[%s1598_s11 + $0x8] sm:$0xff] %vm373_vm8, %v455_v50 }
 0x1f4   : > { %v444_v51 = vpop.xlane.xlu0 %443  ;;  %v402_v47 = vpop.xlane.xlu1 %401 }
 0x1f5   : > { %v454_v46 = vsub.f32 %v407_v14, %v444_v51  ;;  %1163 = vlog2.f32 %v402_v47 }
 0x1f7   : > { %458 = vst.msk [vmem:[%s1598_s11] sm:$0xff] %vm373_vm8, %v454_v46 }
 0x1f8   : > { %v352_v52 = vpop.xlane.xlu0 %351  ;;  %v405_v55 = vpop.xlane.xlu1 %404 }
 0x1f9   : > { %v353_v54 = vcvt.f32.s32 %v352_v52  ;;  %1165 = vlog2.f32 %v405_v55 }
 0x1fb   : > { %v356_v57 = vadd.s32 %v355_v53, %v353_v54 }
 0x1fc   : > { %v320_v58 = vpop.xlane.xlu1 %319  ;;  %v450_v6 = vpop.xlane.xlu0 %449 }
 0x1fd   : > { %376 = vst.msk [vmem:[%s1605_s12 + $0x10] sm:$0xff] %vm373_vm8, %v356_v57  ;;  %v321_v61 = vcvt.f32.s32 %v320_v58 }
 0x1ff   : > { %v324_v62 = vadd.s32 %v323_v59, %v321_v61 }
 0x200   : > { %v336_v63 = vpop.xlane.xlu1 %335 }
 0x201   : > { %374 = vst.msk [vmem:[%s1605_s12] sm:$0xff] %vm373_vm8, %v324_v62  ;;  %v337_v1 = vcvt.f32.s32 %v336_v63 }
 0x202   : > { %v1164_v2 = vpop.eup %1163 }
 0x203   : > { %v411_v4 = vmul.f32 0.6931472, %v1164_v2  ;;  %v340_v5 = vadd.s32 %v339_v0, %v337_v1 }
 0x205   : > { %v456_v7 = vsub.f32 %v411_v4, %v450_v6  ;;  %375 = vst.msk [vmem:[%s1605_s12 + $0x8] sm:$0xff] %vm373_vm8, %v340_v5 }
 0x206   : > { %v1166_v11 = vpop.eup %1165 }
 0x207   : > { %460 = vst.msk [vmem:[%s1598_s11 + $0x10] sm:$0xff] %vm373_vm8, %v456_v7  ;;  %v413_v13 = vmul.f32 0.6931472, %v1166_v11 }
 0x223   : > { %v368_v8 = vpop.xlane.xlu1 %367 }
 0x224   : > { %v369_v10 = vcvt.f32.s32 %v368_v8 }
 0x226   : > { %v372_v12 = vadd.s32 %v371_v9, %v369_v10 }
 0x228   : > { %377 = vst.msk [vmem:[%s1605_s12 + $0x18] sm:$0xff] %vm373_vm8, %v372_v12  ;;  %472 = sbr.rel (!%p1421_p8) target bundleno = 596 (0x254), region = 36 }
 0x229   : > { %v453_v15 = vpop.xlane.xlu1 %452 }
 0x22a   : > { %v457_v19 = vsub.f32 %v413_v13, %v453_v15 }
 0x22c   : > { %461 = vst.msk [vmem:[%s1598_s11 + $0x18] sm:$0xff] %vm373_vm8, %v457_v19 }
 0x22d   : > { %s1744_s18 = smov (!%p475_p11, %s474_s18), 4 }
 0x22e   : > { %s939_s26 = sshll.u32 %s1744_s18, 7 }
 0x22f   : > { %p942_p4 = scmp.eq.s32.totalorder %s939_s26, 0 }
 0x230   : > { %s1633_s28 = sshrl.u32 (!%p942_p4), %s1744_s18, 2 }
 0x231   : > { %483 = sbr.rel (%p942_p4) target bundleno = 596 (0x254), region = 40  ;;  %p943_p5 = scmp.le.s32.totalorder (!%p942_p4), %s1633_s28, 0 }
 0x236   : > { %828 = sbr.rel (%p943_p5) target bundleno = 579 (0x243), region = 197  ;;  %s1731_s30 = smov (!%p943_p5), %s1627_s25 }
 0x237   : > { %s1732_s4 = smov (!%p943_p5), %s1598_s11  ;;  %s1642_s5 = smov (!%p943_p5), 0  }
 0x238   : > { %s1305_s6 = smov (!%p943_p5), 0  }
 0x23b LB: >> { %v552_v22 = vld [vmem:[%s1299_s4] sm:$0xff]  ;;  %v554_v23 = vld [vmem:[%s1299_s4 + $0x8] sm:$0xff]  ;;  %v556_v24 = vld [vmem:[%s1299_s4 + $0x10] sm:$0xff]  ;;  %s560_s9 = sadd.s32 1, %s1303_s5  ;;  %s546_s6 = sadd.s32 1, %s1307_s6   ;;  %s1307_s6 = sphi %s1305_s6, %s546_s6   ;;  %s1303_s5 = sphi %s1642_s5, %s1733_s5   ;;  %s1299_s4 = sphi %s1732_s4, %s565_s4   ;;  %s1295_s30 = sphi %s1731_s30, %s566_s30  }
 0x23c   : >> { %553 = vst [vmem:[%s1295_s30] sm:$0xff] %v552_v22  ;;  %555 = vst [vmem:[%s1295_s30 + $0x8] sm:$0xff] %v554_v23  ;;  %v558_v25 = vld [vmem:[%s1299_s4 + $0x18] sm:$0xff]  ;;  %p561_p6 = scmp.ge.s32.totalorder %s560_s9, %s1633_s28  ;;  %p545_p9 = scmp.ge.s32.totalorder %s546_s6, %s1633_s28 }
 0x23d   : >> { %557 = vst [vmem:[%s1295_s30 + $0x10] sm:$0xff] %v556_v24  ;;  %559 = vst [vmem:[%s1295_s30 + $0x18] sm:$0xff] %v558_v25 }
 0x23e   : >> { %s1746_s9 = smov (%p561_p6, %s560_s9), 0  ;;  %548 = sbr.rel (!%p545_p9) target bundleno = 571 (0x23b), region = 203 }
 0x23f   : >> { %s944_s21 = sshll.u32 %s1746_s9, 5  ;;  %s1733_s5 = smov %s1746_s9 }
 0x240   : >> { %s565_s4 = scalar_lea.vmem %s1598_s11, %s944_s21 [#allocation4]   ;;  %s566_s30 = scalar_lea.vmem %s1627_s25, %s944_s21  }
 0x243 PF: > { %s1658_s27 = sand.u32 3, %s1744_s18   ;;  %s972_s29 = sshll.u32 %s1633_s28, 5 }
 0x244   : > { %s571_s7 = scalar_lea.vmem %s1598_s11, %s972_s29 [#allocation4]   ;;  %s573_s8 = scalar_lea.vmem %s1627_s25, %s972_s29  }
 0x245   : > { %p949_p10 = scmp.le.s32.totalorder %s1658_s27, 0 }
 0x246   : > { %s1309_s10 = smov (!%p949_p10), %s573_s8   ;;  %s1313_s19 = smov (!%p949_p10), %s571_s7  }
 0x247   : > { %842 = sbr.rel (%p949_p10) target bundleno = 596 (0x254), region = 208  ;;  %s1317_s23 = smov (!%p949_p10), 0  }
 0x248   : > { %s1321_s24 = smov (!%p949_p10), 0  }
 0x24c LB: >> { %v583_v26 = vld [vmem:[%s1315_s19] sm:$0xff]  ;;  %s585_s18 = sadd.s32 1, %s1319_s23  ;;  %s577_s24 = sadd.s32 1, %s1323_s24   ;;  %s1323_s24 = sphi %s1321_s24, %s577_s24   ;;  %s1319_s23 = sphi %s1317_s23, %s1318_s23   ;;  %s1315_s19 = sphi %s1313_s19, %s590_s19   ;;  %s1311_s10 = sphi %s1309_s10, %s591_s10  }
 0x24d   : >> { %584 = vst [vmem:[%s1311_s10] sm:$0xff] %v583_v26  ;;  %p586_p12 = scmp.ge.s32.totalorder %s585_s18, %s1658_s27  ;;  %p576_p13 = scmp.ge.s32.totalorder %s577_s24, %s1658_s27 }
 0x24f   : >> { %s1748_s18 = smov (%p586_p12, %s585_s18), 0  ;;  %579 = sbr.rel (!%p576_p13) target bundleno = 588 (0x24c), region = 214 }
 0x250   : >> { %s950_s11 = sshll.u32 %s1748_s18, 3  ;;  %s1318_s23 = smov %s1748_s18  }
 0x251   : >> { %s590_s19 = scalar_lea.vmem %s571_s7, %s950_s11 [#allocation4]   ;;  %s591_s10 = scalar_lea.vmem %s573_s8, %s950_s11  }
 0x254 PF: > { %597 = sbr.rel (!%p1421_p8) target bundleno = 640 (0x280), region = 88  ;;  %s599_s25 = ssub.s32 (%p1421_p8), 10, %s1528_s15 }
 0x255   : > { %s974_s26 = sshll.u32 (%p1421_p8), %s1400_s16, 5  ;;  %p600_p1 = scmp.lt.s32.totalorder (%p1421_p8), %s599_s25, 4 }
 0x256   : > { %s1673_s4 = scalar_lea.vmem (%p1421_p8), %s1728_s3, %s974_s26  }
 0x259   : > { %s1750_s25 = smov (!%p600_p1, %s599_s25), 4 }
 0x25a   : > { %s953_s5 = sshll.u32 %s1750_s25, 7 }
 0x25b   : > { %p956_p0 = scmp.eq.s32.totalorder %s953_s5, 0 }
 0x25c   : > { %s1679_s6 = sshrl.u32 (!%p956_p0), %s1750_s25, 2 }
 0x25d   : > { %608 = sbr.rel (%p956_p0) target bundleno = 640 (0x280), region = 92  ;;  %p957_p8 = scmp.le.s32.totalorder (!%p956_p0), %s1679_s6, 0 }
 0x262   : > { %856 = sbr.rel (%p957_p8) target bundleno = 623 (0x26f), region = 219  ;;  %s1734_s16 = smov (!%p957_p8), %s1673_s4 }
 0x263   : > { %s1735_s22 = smov (!%p957_p8), %s1605_s12  ;;  %s1688_s15 = smov (!%p957_p8), 0  }
 0x264   : > { %s1337_s9 = smov (!%p957_p8), 0  }
 0x267 LB: >> { %v677_v17 = vld [vmem:[%s1331_s22] sm:$0xff]  ;;  %v679_v18 = vld [vmem:[%s1331_s22 + $0x8] sm:$0xff]  ;;  %v681_v28 = vld [vmem:[%s1331_s22 + $0x10] sm:$0xff]  ;;  %s685_s21 = sadd.s32 1, %s1335_s15  ;;  %s671_s9 = sadd.s32 1, %s1339_s9   ;;  %s1339_s9 = sphi %s1337_s9, %s671_s9   ;;  %s1335_s15 = sphi %s1688_s15, %s1736_s15   ;;  %s1331_s22 = sphi %s1735_s22, %s690_s22   ;;  %s1327_s16 = sphi %s1734_s16, %s691_s16  }
 0x268   : >> { %678 = vst [vmem:[%s1327_s16] sm:$0xff] %v677_v17  ;;  %680 = vst [vmem:[%s1327_s16 + $0x8] sm:$0xff] %v679_v18  ;;  %v683_v29 = vld [vmem:[%s1331_s22 + $0x18] sm:$0xff]  ;;  %p686_p2 = scmp.ge.s32.totalorder %s685_s21, %s1679_s6  ;;  %p670_p3 = scmp.ge.s32.totalorder %s671_s9, %s1679_s6 }
 0x269   : >> { %682 = vst [vmem:[%s1327_s16 + $0x10] sm:$0xff] %v681_v28  ;;  %684 = vst [vmem:[%s1327_s16 + $0x18] sm:$0xff] %v683_v29 }
 0x26a   : >> { %s1752_s21 = smov (%p686_p2, %s685_s21), 0  ;;  %673 = sbr.rel (!%p670_p3) target bundleno = 615 (0x267), region = 225 }
 0x26b   : >> { %s958_s27 = sshll.u32 %s1752_s21, 5  ;;  %s1736_s15 = smov %s1752_s21 }
 0x26c   : >> { %s690_s22 = scalar_lea.vmem %s1605_s12, %s958_s27 [#allocation5]   ;;  %s691_s16 = scalar_lea.vmem %s1673_s4, %s958_s27  }
 0x26f PF: > { %s1704_s29 = sand.u32 3, %s1750_s25   ;;  %s975_s7 = sshll.u32 %s1679_s6, 5 }
 0x270   : > { %s696_s8 = scalar_lea.vmem %s1605_s12, %s975_s7 [#allocation5]   ;;  %s698_s10 = scalar_lea.vmem %s1673_s4, %s975_s7  }
 0x271   : > { %p963_p7 = scmp.le.s32.totalorder %s1704_s29, 0 }
 0x272   : > { %s1341_s19 = smov (!%p963_p7), %s698_s10   ;;  %s1345_s23 = smov (!%p963_p7), %s696_s8  }
 0x273   : > { %870 = sbr.rel (%p963_p7) target bundleno = 640 (0x280), region = 230  ;;  %s1349_s24 = smov (!%p963_p7), 0  }
 0x274   : > { %s1353_s18 = smov (!%p963_p7), 0  }
 0x278 LB: >> { %v708_v30 = vld [vmem:[%s1347_s23] sm:$0xff]  ;;  %s710_s11 = sadd.s32 1, %s1351_s24  ;;  %s702_s18 = sadd.s32 1, %s1355_s18   ;;  %s1355_s18 = sphi %s1353_s18, %s702_s18   ;;  %s1351_s24 = sphi %s1349_s24, %s1350_s24   ;;  %s1347_s23 = sphi %s1345_s23, %s715_s23   ;;  %s1343_s19 = sphi %s1341_s19, %s716_s19  }
 0x279   : >> { %709 = vst [vmem:[%s1343_s19] sm:$0xff] %v708_v30  ;;  %p711_p11 = scmp.ge.s32.totalorder %s710_s11, %s1704_s29  ;;  %p701_p4 = scmp.ge.s32.totalorder %s702_s18, %s1704_s29 }
 0x27b   : >> { %s1754_s11 = smov (%p711_p11, %s710_s11), 0  ;;  %704 = sbr.rel (!%p701_p4) target bundleno = 632 (0x278), region = 236 }
 0x27c   : >> { %s964_s12 = sshll.u32 %s1754_s11, 3  ;;  %s1350_s24 = smov %s1754_s11  }
 0x27d   : >> { %s715_s23 = scalar_lea.vmem %s696_s8, %s964_s12 [#allocation5]   ;;  %s716_s19 = scalar_lea.vmem %s698_s10, %s964_s12  }
 0x280 PF: > { %p14_p5 = scmp.ge.s32.totalorder %s1403_s17, 5   ;;  %s1737_s12 = smov %s1283_s13 }
 0x281   : > { %s1738_s13 = smov %s1287_s14  ;;  %s1739_s14 = smov %s1413_s20 }
 0x282   : > { %s1740_s15 = smov %s1403_s17  ;;  %16 = sbr.rel (!%p14_p5) target bundleno = 3 (0x3), region = 247 }
 0x287   :  { %739 = vsyncpa [#allocation3], 1 }
 0x288   :  { %741 = vsyncpa [#allocation3 + $0x1], 1 }

</bundles_post_ra>
